<compile_context>
chip_gen: v7x
topology: tpu7x:2x2x1
jax: 0.10.0
libtpu: 0.0.40
codegen_flags: <defaults>
</compile_context>

<pallas_src>
import functools

import jax
import jax.numpy as jnp
from jax.experimental import pallas as pl
from jax.experimental.pallas import tpu as pltpu

DEGREE = 4
LANE = 128
SUBLANE = 8
COLS = 512            # lane-dense last dim (4 x 128 lanes)
MAX_BLK_ROWS = 1024   # 1024 x 512 x 4 B = 2 MiB per f32 tile


def _poly_kernel(degree, w_ref, x_ref, o_ref):
    # w_ref: SMEM (degree + 1,) float32 scalars
    # x_ref / o_ref: VMEM (blk_r, cols) float32 tiles
    x = x_ref[...]
    # Horner: ((w_d * x + w_{d-1}) * x + ...) * x + w_0
    acc = jnp.full_like(x, w_ref[degree])
    for i in range(degree - 1, -1, -1):
        acc = acc * x + w_ref[i]
    o_ref[...] = acc


def polynomial_forward(x, weights, degree=DEGREE, max_blk_rows=MAX_BLK_ROWS):
    """x: (N,) float32. weights: (degree + 1,) float32. Returns (N,) float32."""
    n = x.shape[0]
    cols = COLS if n >= COLS else LANE
    rows = -(-n // cols)                                         # ceil-div
    blk_r = min(max_blk_rows, -(-rows // SUBLANE) * SUBLANE)     # multiple of 8
    rows_p = -(-rows // blk_r) * blk_r                           # pad rows to tile multiple
    n_p = rows_p * cols
    x_p = x if n_p == n else jnp.pad(x, (0, n_p - n))
    x2d = x_p.reshape(rows_p, cols)

    kernel = functools.partial(_poly_kernel, degree)
    out2d = pl.pallas_call(
        kernel,
        out_shape=jax.ShapeDtypeStruct((rows_p, cols), jnp.float32),
        grid_spec=pltpu.PrefetchScalarGridSpec(
            num_scalar_prefetch=0,
            grid=(rows_p // blk_r,),
            in_specs=[
                pl.BlockSpec(memory_space=pltpu.SMEM),            # weights (scalars)
                pl.BlockSpec((blk_r, cols), lambda i: (i, 0)),    # x tile (streamed)
            ],
            out_specs=pl.BlockSpec((blk_r, cols), lambda i: (i, 0)),
        ),
        compiler_params=pltpu.CompilerParams(
            # Independent row tiles -> shard the grid across TCs (v7x megacore).
            dimension_semantics=("parallel",),
        ),
    )(weights, x2d)
    return out2d.reshape(n_p)[:n]


def _reference(x, weights, degree=DEGREE):
    # Mirrors the PyTorch forward exactly: (N, degree+1) @ (degree+1,)
    exps = jnp.arange(degree + 1, dtype=jnp.float32)
    xpow = x[:, None] ** exps[None, :]
    return xpow @ weights


if __name__ == "__main__":
    key = jax.random.PRNGKey(0)
    kx, kw, kx2, kx3 = jax.random.split(key, 4)

    # Deterministic init mirroring nn.init.uniform_(empty(d+1), -1/sqrt(d+1), 1/sqrt(d+1))
    bound = 1.0 / jnp.sqrt(jnp.float32(DEGREE + 1))
    weights = jax.random.uniform(
        kw, (DEGREE + 1,), dtype=jnp.float32, minval=-bound, maxval=bound
    )

    # Small 1-D input (single big tile path).
    N = 4096
    x = jax.random.normal(kx, (N,), dtype=jnp.float32)
    y = jax.block_until_ready(polynomial_forward(x, weights))
    y_ref = _reference(x, weights)
    assert y.shape == (N,)
    assert jnp.allclose(y, y_ref, atol=1e-5, rtol=1e-5), "mismatch vs reference"

    # Ragged N exercises the wrapper's padding / slicing path.
    N2 = 1000
    x2 = jax.random.normal(kx2, (N2,), dtype=jnp.float32)
    y2 = jax.block_until_ready(polynomial_forward(x2, weights))
    assert y2.shape == (N2,)
    assert jnp.allclose(y2, _reference(x2, weights), atol=1e-5, rtol=1e-5), "ragged mismatch"

    # Multi-step grid (forced small row tiles) exercises the software pipeline.
    N3 = 16384
    x3 = jax.random.normal(kx3, (N3,), dtype=jnp.float32)
    y3 = jax.block_until_ready(polynomial_forward(x3, weights, max_blk_rows=8))
    assert y3.shape == (N3,)
    assert jnp.allclose(y3, _reference(x3, weights), atol=1e-5, rtol=1e-5), "pipelined mismatch"

    print("KERNEL_OK")
</pallas_src>

<mosaic_0001>
module attributes {stable_mosaic.version = 11 : i64} {
  func.func @_poly_kernel(%arg0: i32, %arg1: memref<5xf32, #tpu.memory_space<smem>>, %arg2: memref<8x512xf32, #tpu.memory_space<vmem>>, %arg3: memref<8x512xf32, #tpu.memory_space<vmem>>) attributes {dimension_semantics = [#tpu.dimension_semantics<parallel>], iteration_bounds = array<i64: 1>, scalar_prefetch = 0 : i64, scratch_operands = 0 : i64, tpu.core_type = #tpu.core_type<tc>, window_params = [{transform_indices = @transform_0, window_bounds = array<i64: 5>}, {transform_indices = @transform_1, window_bounds = array<i64: 8, 512>}, {transform_indices = @transform_2, window_bounds = array<i64: 8, 512>}]} {
    %c0 = arith.constant 0 : index
    %c0_0 = arith.constant 0 : index
    %0 = vector.load %arg2[%c0, %c0_0] : memref<8x512xf32, #tpu.memory_space<vmem>>, vector<8x512xf32>
    %c4 = arith.constant 4 : index
    %1 = memref.load %arg1[%c4] : memref<5xf32, #tpu.memory_space<smem>>
    %2 = vector.broadcast %1 : f32 to vector<8x512xf32>
    %3 = arith.mulf %2, %0 : vector<8x512xf32>
    %c3 = arith.constant 3 : index
    %4 = memref.load %arg1[%c3] : memref<5xf32, #tpu.memory_space<smem>>
    %5 = vector.broadcast %4 : f32 to vector<8x512xf32>
    %6 = arith.addf %3, %5 : vector<8x512xf32>
    %7 = arith.mulf %6, %0 : vector<8x512xf32>
    %c2 = arith.constant 2 : index
    %8 = memref.load %arg1[%c2] : memref<5xf32, #tpu.memory_space<smem>>
    %9 = vector.broadcast %8 : f32 to vector<8x512xf32>
    %10 = arith.addf %7, %9 : vector<8x512xf32>
    %11 = arith.mulf %10, %0 : vector<8x512xf32>
    %c1 = arith.constant 1 : index
    %12 = memref.load %arg1[%c1] : memref<5xf32, #tpu.memory_space<smem>>
    %13 = vector.broadcast %12 : f32 to vector<8x512xf32>
    %14 = arith.addf %11, %13 : vector<8x512xf32>
    %15 = arith.mulf %14, %0 : vector<8x512xf32>
    %c0_1 = arith.constant 0 : index
    %16 = memref.load %arg1[%c0_1] : memref<5xf32, #tpu.memory_space<smem>>
    %17 = vector.broadcast %16 : f32 to vector<8x512xf32>
    %18 = arith.addf %15, %17 : vector<8x512xf32>
    %c0_2 = arith.constant 0 : index
    %c0_3 = arith.constant 0 : index
    %19 = vector.load %arg3[%c0_2, %c0_3] : memref<8x512xf32, #tpu.memory_space<vmem>>, vector<8x512xf32>
    tpu.vector_store %arg3[%c0_2, %c0_3], %18 {strides = array<i32>} : memref<8x512xf32, #tpu.memory_space<vmem>>, vector<8x512xf32>,
    return
  }
  func.func @transform_0(%arg0: i32) -> i32 {
    %c0_i32 = arith.constant 0 : i32
    %c0_i32_0 = arith.constant 0 : i32
    return %c0_i32 : i32
  }
  func.func @transform_1(%arg0: i32) -> (i32, i32) {
    %c0_i32 = arith.constant 0 : i32
    %c0_i32_0 = arith.constant 0 : i32
    return %arg0, %c0_i32 : i32, i32
  }
  func.func @transform_2(%arg0: i32) -> (i32, i32) {
    %c0_i32 = arith.constant 0 : i32
    %c0_i32_0 = arith.constant 0 : i32
    return %arg0, %c0_i32 : i32, i32
  }
}

</mosaic_0001>

<bundles_post_ra>
// kernel: tpu_custom_call.1
= control target key start
LH: loop header
LB: loop body
LE: loop exit
PB: predicated region body
PF: predicated region fallthrough
CT: control target
= control target key end

     0   :  { %7 = vsyncpa [#allocation5], 0  ;;  %s222_s0 = inlined_call_operand.hbm [shape: f32[5], index: 0, kind: input, shape index: {}]   ;;  %s223_s1 = inlined_call_operand.hbm [shape: f32[8,512], index: 1, kind: input, shape index: {}]   ;;  %s224_s2 = inlined_call_operand.hbm [shape: f32[8,512], index: 2, kind: output, shape index: {}]  }
   0x1   :  { %8 = vsyncpa [#allocation3], 0 }
   0x2   :  { %9 = vsyncpa [#allocation4], 0  ;;  %s108_s11 = scalar_lea.hbm %s222_s0, 16 }
   0x3   :  { %p109_p0 = scmp.ne.s32.totalorder %s222_s0, %s108_s11  ;;  %p112_p1 = scmp.lt.u32.totalorder %s108_s11, %s222_s0 }
   0x5   :  { %p114_p2 = pnand %p112_p1, %p109_p0 }
   0x7   :  { %117 = shalt.err (!%p114_p2)
}
   0x8   :  { %s168_s16 = smov [#allocation2]   ;;  %s169_s19 = smov [#allocation6]  }
   0x9   :  { %17 = dma.hbm_to_smem %s222_s0, 16, %s168_s16, [#allocation5]  }
   0xa   :  { %s24_s20 = sshll.u32 %s169_s19, 4  ;;  %s118_s23 = scalar_lea.hbm %s223_s1, 512  ;;  %s25_s20 = int_to_ptr.vmem [resolvable:$true] %s24_s20 }
   0xb   :  { %p119_p3 = scmp.ne.s32.totalorder %s223_s1, %s118_s23  ;;  %p122_p4 = scmp.lt.u32.totalorder %s118_s23, %s223_s1 }
   0xd   :  { %p124_p5 = pnand %p122_p4, %p119_p3 }
   0xf   :  { %127 = shalt.err (!%p124_p5)
}
  0x10   :  { %s128_s28 = scalar_lea.vmem %s25_s20, 512  ;;  %p133_p7 = scmp.lt.s32.totalorder %s25_s20, %s25_s20 }
  0x11   :  { %p129_p6 = scmp.ne.s32.totalorder %s25_s20, %s128_s28  ;;  %p134_p8 = scmp.lt.s32.totalorder %s128_s28, %s128_s28 }
  0x13   :  { %p135_p9 = por %p134_p8, %p133_p7 }
  0x15   :  { %p136_p10 = pnand %p135_p9, %p129_p6 }
  0x17   :  { %139 = shalt.err (!%p136_p10)
}
  0x18   :  { %27 = dma.hbm_to_vmem [thread:$0]  %s223_s1, 512, %s25_s20, [#allocation3]  }
  0x19   :  { %162 = dma.done.wait [#allocation5], 16  }
  0x1a   :  { %163 = vsyncadd [#allocation5], 4294967280 }
  0x1b   :  { %164 = dma.done.wait [#allocation3], 512  }
  0x1c   :  { %165 = vsyncadd [#allocation3], 4294966784 }
  0x1d   :  { %34 = sfence }
  0x1e   :  { %s101_s30 = sld [smem:[#allocation2 + $0x4]]  ;;  %s102_s3 = sld [smem:[#allocation2 + $0x3]]  ;;  %v35_v0 = vld [vmem:[#allocation6] sm:$0xff]  ;;  %v36_v1 = vld [vmem:[#allocation6 + $0x8] sm:$0xff]  ;;  %v37_v2 = vld [vmem:[#allocation6 + $0x10] sm:$0xff] }
  0x1f   :  { %s103_s4 = sld [smem:[#allocation2 + $0x2]]  ;;  %v38_v3 = vld [vmem:[#allocation6 + $0x18] sm:$0xff]  ;;  %s104_s5 = sld [smem:[#allocation2 + $0x1]] }
  0x20   :  { %s75_s1 = sld [smem:[#allocation2]]  ;;  %s170_s6 = smov [#allocation7]  }
  0x21   :  { %s91_s7 = sshll.u32 %s170_s6, 4  ;;  %s92_s7 = int_to_ptr.vmem [resolvable:$true] %s91_s7 }
  0x22   :  { %s140_s8 = scalar_lea.vmem %s92_s7, 512  ;;  %p145_p12 = scmp.lt.s32.totalorder %s92_s7, %s92_s7 }
  0x23   :  { %p141_p11 = scmp.ne.s32.totalorder %s92_s7, %s140_s8  ;;  %p146_p13 = scmp.lt.s32.totalorder %s140_s8, %s140_s8 }
  0x24   :  { %v40_v4 = vstv %s101_s30  ;;  %v46_v5 = vstv %s102_s3 }
  0x25   :  { %v41_v6 = vmul.f32 %v40_v4, %v35_v0  ;;  %v42_v7 = vmul.f32 %v40_v4, %v36_v1  ;;  %v43_v8 = vmul.f32 %v40_v4, %v37_v2  ;;  %v44_v9 = vmul.f32 %v40_v4, %v38_v3  ;;  %p147_p0 = por %p146_p13, %p145_p12 }
  0x26   :  { %v56_v12 = vstv %s103_s4  ;;  %v66_v21 = vstv %s104_s5  ;;  %v76_v30 = vstv %s75_s1 }
  0x27   :  { %v47_v10 = vadd.f32 %v46_v5, %v41_v6  ;;  %v48_v11 = vadd.f32 %v46_v5, %v42_v7  ;;  %v49_v13 = vadd.f32 %v46_v5, %v43_v8  ;;  %v50_v14 = vadd.f32 %v46_v5, %v44_v9  ;;  %p148_p1 = pnand %p147_p0, %p141_p11 }
  0x29   :  { %v51_v15 = vmul.f32 %v47_v10, %v35_v0  ;;  %v52_v16 = vmul.f32 %v48_v11, %v36_v1  ;;  %v53_v17 = vmul.f32 %v49_v13, %v37_v2  ;;  %v54_v18 = vmul.f32 %v50_v14, %v38_v3 }
  0x2b   :  { %v57_v19 = vadd.f32 %v56_v12, %v51_v15  ;;  %v58_v20 = vadd.f32 %v56_v12, %v52_v16  ;;  %v59_v22 = vadd.f32 %v56_v12, %v53_v17  ;;  %v60_v23 = vadd.f32 %v56_v12, %v54_v18 }
  0x2d   :  { %v61_v24 = vmul.f32 %v57_v19, %v35_v0  ;;  %v62_v25 = vmul.f32 %v58_v20, %v36_v1  ;;  %v63_v26 = vmul.f32 %v59_v22, %v37_v2  ;;  %v64_v27 = vmul.f32 %v60_v23, %v38_v3 }
  0x2f   :  { %v67_v28 = vadd.f32 %v66_v21, %v61_v24  ;;  %v68_v29 = vadd.f32 %v66_v21, %v62_v25  ;;  %v69_v31 = vadd.f32 %v66_v21, %v63_v26  ;;  %v70_v32 = vadd.f32 %v66_v21, %v64_v27 }
  0x31   :  { %v71_v33 = vmul.f32 %v67_v28, %v35_v0  ;;  %v72_v34 = vmul.f32 %v68_v29, %v36_v1  ;;  %v73_v35 = vmul.f32 %v69_v31, %v37_v2  ;;  %v74_v36 = vmul.f32 %v70_v32, %v38_v3 }
  0x33   :  { %v77_v37 = vadd.f32 %v76_v30, %v71_v33  ;;  %v78_v38 = vadd.f32 %v76_v30, %v72_v34  ;;  %v79_v39 = vadd.f32 %v76_v30, %v73_v35  ;;  %v80_v40 = vadd.f32 %v76_v30, %v74_v36 }
  0x35   :  { %81 = vst [vmem:[#allocation7] sm:$0xff] %v77_v37  ;;  %82 = vst [vmem:[#allocation7 + $0x8] sm:$0xff] %v78_v38 }
  0x36   :  { %83 = vst [vmem:[#allocation7 + $0x10] sm:$0xff] %v79_v39  ;;  %84 = vst [vmem:[#allocation7 + $0x18] sm:$0xff] %v80_v40 }
  0x37   :  { %151 = shalt.err (!%p148_p1)
}
  0x38   :  { %s152_s11 = scalar_lea.hbm %s224_s2, 512 }
  0x39   :  { %p153_p2 = scmp.ne.s32.totalorder %s224_s2, %s152_s11  ;;  %p156_p3 = scmp.lt.u32.totalorder %s152_s11, %s224_s2 }
  0x3b   :  { %p158_p4 = pnand %p156_p3, %p153_p2 }
  0x3d   :  { %161 = shalt.err (!%p158_p4)
}
  0x3e   :  { %94 = dma.vmem_to_hbm [thread:$0]  %s92_s7, 512, %s224_s2, [#allocation4]  }
  0x3f   :  { %166 = dma.done.wait [#allocation4], 512  }
  0x40   :  { %167 = vsyncadd [#allocation4], 4294966784 }
  0x41   :  { %98 = vsyncpa [#allocation3], 1 }
  0x42   :  { %99 = vsyncpa [#allocation4], 1 }
  0x43   :  { %100 = vsyncpa [#allocation5], 1 }

</bundles_post_ra>
